<compile_context>
chip_gen: v6e
topology: v6e:2x2x1
jax: 0.10.0
libtpu: 0.0.40
codegen_flags: <defaults>
</compile_context>

<pallas_src>
import functools

import jax
import jax.numpy as jnp
from jax.experimental import pallas as pl
from jax.experimental.pallas import tpu as pltpu


def _dice_partial_kernel(p_ref, t_ref, o_ref, inter_acc, union_acc, *,
                         block_rows, valid_rows, blocks_per_core, n_blocks,
                         acc_rows):
    """Accumulates one core's (intersection, union) partial sums."""
    c = pl.program_id(0)            # core-split axis ("parallel")
    k = pl.program_id(1)            # sequential reduction axis ("arbitrary")
    b = c * blocks_per_core + k     # logical (unclamped) block id

    @pl.when(k == 0)
    def _():
        inter_acc[...] = jnp.zeros_like(inter_acc)
        union_acc[...] = jnp.zeros_like(union_acc)

    p = p_ref[...].astype(jnp.float32)
    t = t_ref[...].astype(jnp.float32)
    cols = p.shape[1]

    def accumulate(pv, tv):
        inter = pv * tv
        union = pv + tv
        if acc_rows == 8:
            # Full-vreg accumulators: reduce across (8,128) tiles with pure
            # VPU adds; no per-step cross-sublane (XLU) reduce on the
            # loop-carried value.
            inter_acc[...] += jnp.sum(inter.reshape(-1, 8, cols), axis=0)
            union_acc[...] += jnp.sum(union.reshape(-1, 8, cols), axis=0)
        else:
            inter_acc[...] += jnp.sum(inter, axis=0, keepdims=True)
            union_acc[...] += jnp.sum(union, axis=0, keepdims=True)

    has_tail = (valid_rows % block_rows) != 0
    full_blocks = n_blocks - 1 if has_tail else n_blocks

    # Hot path: fully-valid block, no per-element masking.
    @pl.when(b < full_blocks)
    def _():
        accumulate(p, t)

    if has_tail:
        # Cold path: only the single partial tail block is masked.  Use
        # jnp.where (not multiply) so inf/NaN garbage in the OOB rows cannot
        # poison the accumulator.  Clamped duplicate blocks (b >= n_blocks)
        # fall through both branches and contribute nothing.
        @pl.when(b == n_blocks - 1)
        def _():
            row0 = b * block_rows
            rid = jax.lax.broadcasted_iota(jnp.int32, p.shape, 0) + row0
            valid = rid < valid_rows
            accumulate(jnp.where(valid, p, 0.0), jnp.where(valid, t, 0.0))

    @pl.when(k == pl.num_programs(1) - 1)
    def _():
        o_ref[0, 0] = jnp.sum(inter_acc[...])
        o_ref[0, 1] = jnp.sum(union_acc[...])


def _choose_cols(total):
    for c in (2048, 1024, 512, 256, 128):
        if total % c == 0:
            return c
    return None


def _device_kind():
    try:
        return jax.devices()[0].device_kind.lower()
    except Exception:
        return ""


def _default_block_bytes(kind):
    # Mem-bound streaming reduction: bigger blocks amortize the ~0.35us
    # per-grid-step overhead.  v7x (3.2 TB/s) needs the biggest blocks.
    if "v7" in kind:
        return 8 << 20
    if "v6" in kind:
        return 4 << 20
    return 2 << 20      # v5e / unknown


def _num_tensorcores(kind):
    """Best-effort TensorCores-per-chip (for megacore grid sharding)."""
    try:
        info = pltpu.get_tpu_info()
        for attr in ("num_cores", "core_count", "num_tensorcores",
                     "tensorcore_count", "num_tensor_cores"):
            v = getattr(info, attr, None)
            if isinstance(v, int) and 1 <= v <= 8:
                return min(int(v), 2)
    except Exception:
        pass
    if "lite" in kind or "v5e" in kind or "v6e" in kind:
        return 1
    if "v7" in kind or "v4" in kind or "v5p" in kind:
        return 2
    return 1


def dice_loss(predict, target, *, smooth=True, n_split=None, block_bytes=None):
    """Pallas TPU implementation of DiceLoss.forward. Returns a f32 scalar."""
    assert predict.shape == target.shape, (
        "the size of predict and target must be equal.")
    epsilon = jnp.float32(1.0 if smooth else 1e-05)

    kind = _device_kind()
    if block_bytes is None:
        block_bytes = _default_block_bytes(kind)
    if n_split is None:
        n_split = _num_tensorcores(kind)

    total = 1
    for d in predict.shape:
        total *= d
    itemsize = jnp.dtype(predict.dtype).itemsize

    pre = predict.reshape(-1)
    tar = target.reshape(-1)

    cols = _choose_cols(total)
    if cols is None:
        # Rare fallback: pad the flat stream to a multiple of 128 lanes with
        # zeros (zeros change neither sum).  Only path that copies.
        cols = 128
        pad = (-total) % cols
        pre = jnp.pad(pre, (0, pad))
        tar = jnp.pad(tar, (0, pad))

    rows = pre.shape[0] // cols
    pre2 = pre.reshape(rows, cols)
    tar2 = tar.reshape(rows, cols)

    # Block sizing in the *input* dtype so bf16/int8 inputs keep the intended
    # bytes-per-step instead of silently halving/quartering the block.
    target_rows = max(1, block_bytes // (itemsize * cols))
    if rows <= target_rows:
        br = rows                               # full extent is always legal
    else:
        br = max(32, (target_rows // 32) * 32)  # dense for f32/bf16/int8 tiles
        if br > rows:
            br = rows

    n_blocks = pl.cdiv(rows, br)
    n_split = max(1, min(n_split, n_blocks))    # 2-way split feeds v7x's 2 TCs

    # On a 2-way split, prefer a block size that gives both cores equal work.
    if n_split == 2 and n_blocks > 1 and n_blocks % 2 == 1:
        nb_even = n_blocks + 1
        br_even = -(-rows // nb_even)
        br_even = max(8, ((br_even + 7) // 8) * 8)
        if br_even <= rows and pl.cdiv(rows, br_even) % 2 == 0:
            br = br_even
            n_blocks = pl.cdiv(rows, br)

    blocks_per_core = pl.cdiv(n_blocks, n_split)
    acc_rows = 8 if (br % 8 == 0) else 1

    def in_index(c, k):
        # Clamp so the DMA never points past the array; the (at most one)
        # over-range logical block is skipped inside the kernel.
        return (jnp.minimum(c * blocks_per_core + k, n_blocks - 1), 0)

    kernel = functools.partial(
        _dice_partial_kernel,
        block_rows=br, valid_rows=rows, blocks_per_core=blocks_per_core,
        n_blocks=n_blocks, acc_rows=acc_rows)

    # 2 inputs x 2 pipeline buffers per input, plus headroom for accumulators.
    vmem_need = 4 * br * cols * itemsize
    vmem_limit = int(min(max(vmem_need + (8 << 20), 32 << 20), 48 << 20))

    cost = pl.CostEstimate(
        flops=4 * total,
        transcendentals=0,
        bytes_accessed=2 * total * itemsize)

    partials = pl.pallas_call(
        kernel,
        out_shape=jax.ShapeDtypeStruct((n_split, 2), jnp.float32),
        grid_spec=pltpu.PrefetchScalarGridSpec(
            num_scalar_prefetch=0,
            grid=(n_split, blocks_per_core),
            in_specs=[
                pl.BlockSpec((br, cols), in_index),
                pl.BlockSpec((br, cols), in_index),
            ],
            out_specs=pl.BlockSpec((1, 2), lambda c, k: (c, 0),
                                   memory_space=pltpu.SMEM),
            scratch_shapes=[pltpu.VMEM((acc_rows, cols), jnp.float32),
                            pltpu.VMEM((acc_rows, cols), jnp.float32)],
        ),
        compiler_params=pltpu.CompilerParams(
            dimension_semantics=("parallel", "arbitrary"),
            vmem_limit_bytes=vmem_limit),
        cost_estimate=cost,
    )(pre2, tar2)

    inter = partials[:, 0].sum()
    union = partials[:, 1].sum()
    return 1.0 - 2.0 * (inter + epsilon) / (union + epsilon)


def _dice_loss_ref(predict, target, *, smooth=True):
    epsilon = 1.0 if smooth else 1e-05
    num = predict.shape[0]
    pre = predict.reshape(num, -1).astype(jnp.float32)
    tar = target.reshape(num, -1).astype(jnp.float32)
    intersection = (pre * tar).sum(-1).sum()
    union = (pre + tar).sum(-1).sum()
    return 1.0 - 2.0 * (intersection + epsilon) / (union + epsilon)


if __name__ == "__main__":
    key = jax.random.PRNGKey(0)
    k1, k2, k3, k4 = jax.random.split(key, 4)

    # Case 1: NCHW input as the PyTorch module would receive from a conv net.
    predict = jax.nn.sigmoid(
        jax.random.normal(k1, (2, 4, 16, 16), dtype=jnp.float32))
    target = (jax.random.uniform(k2, (2, 4, 16, 16)) > 0.5).astype(jnp.float32)
    out = jax.block_until_ready(dice_loss(predict, target, smooth=True))
    ref = _dice_loss_ref(predict, target, smooth=True)
    assert jnp.allclose(out, ref, rtol=1e-5, atol=1e-5), (out, ref)

    # Case 2: odd spatial size + tiny block budget + forced 2-way split to
    # exercise the masked tail block, the clamped duplicate block skip and
    # the per-core partials.
    predict2 = jax.nn.sigmoid(
        jax.random.normal(k3, (2, 4, 26, 40), dtype=jnp.float32))
    target2 = (jax.random.uniform(k4, (2, 4, 26, 40)) > 0.5).astype(jnp.float32)
    out2 = jax.block_until_ready(
        dice_loss(predict2, target2, smooth=True, n_split=2, block_bytes=4096))
    ref2 = _dice_loss_ref(predict2, target2, smooth=True)
    assert jnp.allclose(out2, ref2, rtol=1e-5, atol=1e-5), (out2, ref2)

    # Case 3: bf16 inputs exercise the dtype-aware block sizing and the
    # in-kernel f32 upcast (no smooth -> eps = 1e-5 path).
    predict3 = predict2.astype(jnp.bfloat16)
    target3 = target2.astype(jnp.bfloat16)
    out3 = jax.block_until_ready(dice_loss(predict3, target3, smooth=False))
    ref3 = _dice_loss_ref(predict3, target3, smooth=False)
    assert jnp.allclose(out3, ref3, rtol=1e-4, atol=1e-4), (out3, ref3)

    print("KERNEL_OK")
</pallas_src>

<mosaic_0001>
module attributes {stable_mosaic.version = 11 : i64} {
  func.func @_dice_partial_kernel(%arg0: i32, %arg1: i32, %arg2: memref<1x2048xf32, #tpu.memory_space<vmem>>, %arg3: memref<1x2048xf32, #tpu.memory_space<vmem>>, %arg4: memref<1x2xf32, #tpu.memory_space<smem>>, %arg5: memref<1x2048xf32, #tpu.memory_space<vmem>>, %arg6: memref<1x2048xf32, #tpu.memory_space<vmem>>) attributes {dimension_semantics = [#tpu.dimension_semantics<parallel>, #tpu.dimension_semantics<arbitrary>], iteration_bounds = array<i64: 1, 1>, scalar_prefetch = 0 : i64, scratch_operands = 2 : i64, tpu.core_type = #tpu.core_type<tc>, window_params = [{transform_indices = @transform_0, window_bounds = array<i64: 1, 2048>}, {transform_indices = @transform_1, window_bounds = array<i64: 1, 2048>}, {transform_indices = @transform_2, window_bounds = array<i64: 1, 2>}]} {
    %c1_i32 = arith.constant 1 : i32
    %0 = arith.muli %arg0, %c1_i32 : i32
    %1 = arith.addi %0, %arg1 : i32
    %c0_i32 = arith.constant 0 : i32
    %2 = arith.cmpi eq, %arg1, %c0_i32 : i32
    %3 = arith.extui %2 : i1 to i32
    %c0_i32_0 = arith.constant 0 : i32
    %4 = arith.cmpi ne, %3, %c0_i32_0 : i32
    scf.if %4 {
      %cst = arith.constant 0.000000e+00 : f32
      %13 = vector.broadcast %cst : f32 to vector<1x2048xf32>
      %c0_8 = arith.constant 0 : index
      %c0_9 = arith.constant 0 : index
      %14 = vector.load %arg5[%c0_8, %c0_9] : memref<1x2048xf32, #tpu.memory_space<vmem>>, vector<1x2048xf32>
      tpu.vector_store %arg5[%c0_8, %c0_9], %13 {strides = array<i32>} : memref<1x2048xf32, #tpu.memory_space<vmem>>, vector<1x2048xf32>,
      %cst_10 = arith.constant 0.000000e+00 : f32
      %15 = vector.broadcast %cst_10 : f32 to vector<1x2048xf32>
      %c0_11 = arith.constant 0 : index
      %c0_12 = arith.constant 0 : index
      %16 = vector.load %arg6[%c0_11, %c0_12] : memref<1x2048xf32, #tpu.memory_space<vmem>>, vector<1x2048xf32>
      tpu.vector_store %arg6[%c0_11, %c0_12], %15 {strides = array<i32>} : memref<1x2048xf32, #tpu.memory_space<vmem>>, vector<1x2048xf32>,
    } else {
    }
    %c0 = arith.constant 0 : index
    %c0_1 = arith.constant 0 : index
    %5 = vector.load %arg2[%c0, %c0_1] : memref<1x2048xf32, #tpu.memory_space<vmem>>, vector<1x2048xf32>
    %c0_2 = arith.constant 0 : index
    %c0_3 = arith.constant 0 : index
    %6 = vector.load %arg3[%c0_2, %c0_3] : memref<1x2048xf32, #tpu.memory_space<vmem>>, vector<1x2048xf32>
    %c1_i32_4 = arith.constant 1 : i32
    %7 = arith.cmpi slt, %1, %c1_i32_4 : i32
    %8 = arith.extui %7 : i1 to i32
    %c0_i32_5 = arith.constant 0 : i32
    %9 = arith.cmpi ne, %8, %c0_i32_5 : i32
    scf.if %9 {
      %13 = arith.mulf %5, %6 : vector<1x2048xf32>
      %14 = arith.addf %5, %6 : vector<1x2048xf32>
      %c0_8 = arith.constant 0 : index
      %c0_9 = arith.constant 0 : index
      %15 = vector.load %arg5[%c0_8, %c0_9] : memref<1x2048xf32, #tpu.memory_space<vmem>>, vector<1x2048xf32>
      %cst = arith.constant dense<0.000000e+00> : vector<2048xf32>
      %16 = vector.multi_reduction <add>, %13, %cst [0] : vector<1x2048xf32> to vector<2048xf32>
      %17 = vector.shape_cast %16 : vector<2048xf32> to vector<1x2048xf32>
      %18 = arith.addf %15, %17 : vector<1x2048xf32>
      %c0_10 = arith.constant 0 : index
      %c0_11 = arith.constant 0 : index
      %19 = vector.load %arg5[%c0_10, %c0_11] : memref<1x2048xf32, #tpu.memory_space<vmem>>, vector<1x2048xf32>
      tpu.vector_store %arg5[%c0_10, %c0_11], %18 {strides = array<i32>} : memref<1x2048xf32, #tpu.memory_space<vmem>>, vector<1x2048xf32>,
      %c0_12 = arith.constant 0 : index
      %c0_13 = arith.constant 0 : index
      %20 = vector.load %arg6[%c0_12, %c0_13] : memref<1x2048xf32, #tpu.memory_space<vmem>>, vector<1x2048xf32>
      %cst_14 = arith.constant dense<0.000000e+00> : vector<2048xf32>
      %21 = vector.multi_reduction <add>, %14, %cst_14 [0] : vector<1x2048xf32> to vector<2048xf32>
      %22 = vector.shape_cast %21 : vector<2048xf32> to vector<1x2048xf32>
      %23 = arith.addf %20, %22 : vector<1x2048xf32>
      %c0_15 = arith.constant 0 : index
      %c0_16 = arith.constant 0 : index
      %24 = vector.load %arg6[%c0_15, %c0_16] : memref<1x2048xf32, #tpu.memory_space<vmem>>, vector<1x2048xf32>
      tpu.vector_store %arg6[%c0_15, %c0_16], %23 {strides = array<i32>} : memref<1x2048xf32, #tpu.memory_space<vmem>>, vector<1x2048xf32>,
    } else {
    }
    %c0_i32_6 = arith.constant 0 : i32
    %10 = arith.cmpi eq, %arg1, %c0_i32_6 : i32
    %11 = arith.extui %10 : i1 to i32
    %c0_i32_7 = arith.constant 0 : i32
    %12 = arith.cmpi ne, %11, %c0_i32_7 : i32
    scf.if %12 {
      %c0_8 = arith.constant 0 : index
      %c0_9 = arith.constant 0 : index
      %13 = vector.load %arg5[%c0_8, %c0_9] : memref<1x2048xf32, #tpu.memory_space<vmem>>, vector<1x2048xf32>
      %14 = vector.shape_cast %13 : vector<1x2048xf32> to vector<1x1x2048xf32>
      %cst = arith.constant dense<0.000000e+00> : vector<1xf32>
      %15 = vector.multi_reduction <add>, %14, %cst [1, 2] : vector<1x1x2048xf32> to vector<1xf32>
      %16 = vector.shape_cast %15 : vector<1xf32> to vector<1x1x1xf32>
      %17 = vector.extract %16[0, 0, 0] : f32 from vector<1x1x1xf32>
      %c0_10 = arith.constant 0 : index
      %c0_11 = arith.constant 0 : index
      %18 = memref.load %arg4[%c0_10, %c0_11] : memref<1x2xf32, #tpu.memory_space<smem>>
      memref.store %17, %arg4[%c0_10, %c0_11] : memref<1x2xf32, #tpu.memory_space<smem>>
      %c0_12 = arith.constant 0 : index
      %c0_13 = arith.constant 0 : index
      %19 = vector.load %arg6[%c0_12, %c0_13] : memref<1x2048xf32, #tpu.memory_space<vmem>>, vector<1x2048xf32>
      %20 = vector.shape_cast %19 : vector<1x2048xf32> to vector<1x1x2048xf32>
      %cst_14 = arith.constant dense<0.000000e+00> : vector<1xf32>
      %21 = vector.multi_reduction <add>, %20, %cst_14 [1, 2] : vector<1x1x2048xf32> to vector<1xf32>
      %22 = vector.shape_cast %21 : vector<1xf32> to vector<1x1x1xf32>
      %23 = vector.extract %22[0, 0, 0] : f32 from vector<1x1x1xf32>
      %c0_15 = arith.constant 0 : index
      %c1 = arith.constant 1 : index
      %24 = memref.load %arg4[%c0_15, %c1] : memref<1x2xf32, #tpu.memory_space<smem>>
      memref.store %23, %arg4[%c0_15, %c1] : memref<1x2xf32, #tpu.memory_space<smem>>
    } else {
    }
    return
  }
  func.func @transform_0(%arg0: i32, %arg1: i32) -> (i32, i32) {
    %c1_i32 = arith.constant 1 : i32
    %0 = arith.muli %arg0, %c1_i32 : i32
    %1 = arith.addi %0, %arg1 : i32
    %c0_i32 = arith.constant 0 : i32
    %2 = arith.minsi %1, %c0_i32 : i32
    %c0_i32_0 = arith.constant 0 : i32
    %c0_i32_1 = arith.constant 0 : i32
    return %2, %c0_i32_0 : i32, i32
  }
  func.func @transform_1(%arg0: i32, %arg1: i32) -> (i32, i32) {
    %c1_i32 = arith.constant 1 : i32
    %0 = arith.muli %arg0, %c1_i32 : i32
    %1 = arith.addi %0, %arg1 : i32
    %c0_i32 = arith.constant 0 : i32
    %2 = arith.minsi %1, %c0_i32 : i32
    %c0_i32_0 = arith.constant 0 : i32
    %c0_i32_1 = arith.constant 0 : i32
    return %2, %c0_i32_0 : i32, i32
  }
  func.func @transform_2(%arg0: i32, %arg1: i32) -> (i32, i32) {
    %c0_i32 = arith.constant 0 : i32
    %c0_i32_0 = arith.constant 0 : i32
    return %arg0, %c0_i32 : i32, i32
  }
}

</mosaic_0001>

<bundles_post_ra>
// kernel: tpu_custom_call.1
= control target key start
LH: loop header
LB: loop body
LE: loop exit
PB: predicated region body
PF: predicated region fallthrough
CT: control target
= control target key end

     0   :  { %7 = vsyncpa [#allocation5], 0  ;;  %s544_s0 = inlined_call_operand.hbm [shape: f32[1,2048], index: 0, kind: input, shape index: {}]   ;;  %s545_s1 = inlined_call_operand.hbm [shape: f32[1,2048], index: 1, kind: input, shape index: {}]   ;;  %s546_s2 = inlined_call_operand.hbm [shape: f32[1,2], index: 2, kind: output, shape index: {}]  }
   0x1   :  { %8 = vsyncpa [#allocation8], 0 }
   0x2   :  { %9 = vsyncpa [#allocation6], 0  ;;  %s427_s9 = smov [#allocation4]   ;;  %s428_s11 = smov [#allocation7]  }
   0x3   :  { %s22_s10 = sshll.u32 %s427_s9, 4  ;;  %s38_s12 = sshll.u32 %s428_s11, 4  ;;  %s23_s10 = int_to_ptr.vmem [resolvable:$true] %s22_s10  ;;  %s39_s12 = int_to_ptr.vmem [resolvable:$true] %s38_s12 }
   0x4   :  { %s381_s13 = scalar_lea.vmem %s23_s10, 256  ;;  %p386_p1 = scmp.lt.s32.totalorder %s23_s10, %s23_s10 }
   0x5   :  { %p382_p0 = scmp.ne.s32.totalorder %s23_s10, %s381_s13  ;;  %p387_p2 = scmp.lt.s32.totalorder %s381_s13, %s381_s13 }
   0x7   :  { %p388_p3 = por %p387_p2, %p386_p1 }
   0x9   :  { %p389_p4 = pnand %p388_p3, %p382_p0 }
   0xb   :  { %392 = shalt.err (!%p389_p4)
}
   0xc   :  { %25 = dma.hbm_to_vmem [thread:$0]  %s544_s0, 256, %s23_s10, [#allocation5]  }
   0xd   :  { %s401_s16 = scalar_lea.vmem %s39_s12, 256  ;;  %p406_p6 = scmp.lt.s32.totalorder %s39_s12, %s39_s12 }
   0xe   :  { %p402_p5 = scmp.ne.s32.totalorder %s39_s12, %s401_s16  ;;  %p407_p7 = scmp.lt.s32.totalorder %s401_s16, %s401_s16 }
  0x10   :  { %p408_p8 = por %p407_p7, %p406_p6 }
  0x12   :  { %p409_p9 = pnand %p408_p8, %p402_p5 }
  0x14   :  { %412 = shalt.err (!%p409_p9)
}
  0x15   :  { %41 = dma.hbm_to_vmem [thread:$0]  %s545_s1, 256, %s39_s12, [#allocation8]  }
  0x16   :  { %421 = dma.done.wait [#allocation5], 256  }
  0x17   :  { %422 = vsyncadd [#allocation5], 4294967040 }
  0x18   :  { %423 = dma.done.wait [#allocation8], 256  }
  0x19   :  { %424 = vsyncadd [#allocation8], 4294967040  ;;  %v98_v0 = vlaneseq  ;;  %v63_v5 = vld [vmem:[#allocation4] sm:$0xff]  ;;  %v65_v6 = vld [vmem:[#allocation7] sm:$0xff]  ;;  %vm178_vm0 = vcmask 1040384   ;;  %s429_s19 = smov [#allocation9]  }
  0x1a   :  { %v71_v7 = vmul.f32 %v65_v6, %v63_v5  ;;  %v64_v20 = vld [vmem:[#allocation4 + $0x8] sm:$0xff]  ;;  %v66_v21 = vld [vmem:[#allocation7 + $0x8] sm:$0xff]  ;;  %v73_v22 = vadd.f32 %v65_v6, %v63_v5 }
  0x1b   :  { %v99_v1 = vshrl.u32 %v98_v0, 7  ;;  %v477_v28 = vmul.f32 %v66_v21, %v64_v20  ;;  %v74_v57 = vadd.f32 %v66_v21, %v64_v20 }
  0x1d   :  { %v451_v2 = vsub.s32 0, %v99_v1  ;;  %v453_v3 = vsub.s32 1, %v99_v1  ;;  %v455_v4 = vsub.s32 2, %v99_v1  ;;  %v457_v8 = vsub.s32 3, %v99_v1 }
  0x1e   :  { %v462_v12 = vsub.s32 4, %v99_v1  ;;  %v465_v14 = vsub.s32 5, %v99_v1  ;;  %v467_v15 = vsub.s32 6, %v99_v1  ;;  %v474_v25 = vsub.s32 7, %v99_v1 }
  0x1f   :  { %v101_v9 = vrot.slane %v71_v7, %v451_v2  ;;  %v105_v10 = vrot.slane %v71_v7, %v453_v3  ;;  %v109_v11 = vrot.slane %v71_v7, %v455_v4  ;;  %v113_v13 = vrot.slane %v71_v7, %v457_v8 }
  0x20   :  { %v117_v16 = vrot.slane %v71_v7, %v462_v12  ;;  %v121_v24 = vrot.slane %v71_v7, %v465_v14  ;;  %v125_v29 = vrot.slane %v71_v7, %v467_v15  ;;  %v232_v32 = vrot.slane %v73_v22, %v453_v3 }
  0x21   :  { %v179_v17 = vsel %vm178_vm0, %v101_v9, 0.0  ;;  %v180_v18 = vsel %vm178_vm0, %v105_v10, 0.0  ;;  %v182_v19 = vsel %vm178_vm0, %v109_v11, 0.0  ;;  %v184_v26 = vsel %vm178_vm0, %v113_v13, 0.0 }
  0x22   :  { %v181_v23 = vadd.f32 %v180_v18, %v179_v17  ;;  %v186_v30 = vsel %vm178_vm0, %v117_v16, 0.0  ;;  %v236_v33 = vrot.slane %v73_v22, %v455_v4  ;;  %v129_v34 = vrot.slane %v71_v7, %v474_v25 }
  0x23   :  { %v188_v35 = vsel %vm178_vm0, %v121_v24, 0.0  ;;  %v228_v36 = vrot.slane %v73_v22, %v451_v2  ;;  %v240_v38 = vrot.slane %v73_v22, %v457_v8  ;;  %v133_v39 = vrot.slane %v477_v28, %v451_v2 }
  0x24   :  { %v183_v27 = vadd.f32 %v182_v19, %v181_v23  ;;  %v190_v40 = vsel %vm178_vm0, %v125_v29, 0.0  ;;  %v244_v41 = vrot.slane %v73_v22, %v462_v12  ;;  %v306_v44 = vsel %vm178_vm0, %v232_v32, 0.0 }
  0x25   :  { %v305_v43 = vsel %vm178_vm0, %v228_v36, 0.0  ;;  %v308_v45 = vsel %vm178_vm0, %v236_v33, 0.0  ;;  %v137_v46 = vrot.slane %v477_v28, %v453_v3  ;;  %v192_v47 = vsel %vm178_vm0, %v129_v34, 0.0 }
  0x26   :  { %v185_v31 = vadd.f32 %v184_v26, %v183_v27  ;;  %v307_v48 = vadd.f32 %v306_v44, %v305_v43  ;;  %v248_v50 = vrot.slane %v73_v22, %v465_v14  ;;  %v310_v51 = vsel %vm178_vm0, %v240_v38, 0.0 }
  0x27   :  { %v141_v52 = vrot.slane %v477_v28, %v455_v4  ;;  %v194_v53 = vsel %vm178_vm0, %v133_v39, 0.0  ;;  %v252_v56 = vrot.slane %v73_v22, %v467_v15  ;;  %v312_v58 = vsel %vm178_vm0, %v244_v41, 0.0 }
  0x28   :  { %v187_v37 = vadd.f32 %v186_v30, %v185_v31  ;;  %v309_v54 = vadd.f32 %v308_v45, %v307_v48  ;;  %v145_v59 = vrot.slane %v477_v28, %v457_v8  ;;  %v196_v60 = vsel %vm178_vm0, %v137_v46, 0.0 }
  0x29   :  { %v256_v63 = vrot.slane %v73_v22, %v474_v25  ;;  %v314_v0 = vsel %vm178_vm0, %v248_v50, 0.0  ;;  %v149_v1 = vrot.slane %v477_v28, %v462_v12  ;;  %v198_v5 = vsel %vm178_vm0, %v141_v52, 0.0 }
  0x2a   :  { %v189_v42 = vadd.f32 %v188_v35, %v187_v37  ;;  %v311_v61 = vadd.f32 %v310_v51, %v309_v54  ;;  %v260_v9 = vrot.slane %v74_v57, %v451_v2  ;;  %v316_v10 = vsel %vm178_vm0, %v252_v56, 0.0 }
  0x2b   :  { %v153_v11 = vrot.slane %v477_v28, %v465_v14  ;;  %v200_v13 = vsel %vm178_vm0, %v145_v59, 0.0  ;;  %v264_v18 = vrot.slane %v74_v57, %v453_v3  ;;  %v318_v19 = vsel %vm178_vm0, %v256_v63, 0.0 }
  0x2c   :  { %v191_v49 = vadd.f32 %v190_v40, %v189_v42  ;;  %v313_v6 = vadd.f32 %v312_v58, %v311_v61  ;;  %v157_v20 = vrot.slane %v477_v28, %v467_v15  ;;  %v202_v21 = vsel %vm178_vm0, %v149_v1, 0.0 }
  0x2d   :  { %v268_v23 = vrot.slane %v74_v57, %v455_v4  ;;  %v320_v24 = vsel %vm178_vm0, %v260_v9, 0.0  ;;  %v161_v26 = vrot.slane %v477_v28, %v474_v25  ;;  %v204_v27 = vsel %vm178_vm0, %v153_v11, 0.0 }
  0x2e   :  { %v193_v55 = vadd.f32 %v192_v47, %v191_v49  ;;  %v315_v16 = vadd.f32 %v314_v0, %v313_v6  ;;  %v272_v30 = vrot.slane %v74_v57, %v457_v8  ;;  %v322_v31 = vsel %vm178_vm0, %v264_v18, 0.0 }
  0x2f   :  { %v206_v32 = vsel %vm178_vm0, %v157_v20, 0.0  ;;  %v276_v35 = vrot.slane %v74_v57, %v462_v12  ;;  %v324_v4 = vsel %vm178_vm0, %v268_v23, 0.0  ;;  %v208_v36 = vsel %vm178_vm0, %v161_v26, 0.0 }
  0x30   :  { %v195_v62 = vadd.f32 %v194_v53, %v193_v55  ;;  %v317_v22 = vadd.f32 %v316_v10, %v315_v16  ;;  %v280_v38 = vrot.slane %v74_v57, %v465_v14  ;;  %v326_v39 = vsel %vm178_vm0, %v272_v30, 0.0 }
  0x31   :  { %v284_v41 = vrot.slane %v74_v57, %v467_v15  ;;  %v328_v42 = vsel %vm178_vm0, %v276_v35, 0.0  ;;  %v288_v12 = vrot.slane %v74_v57, %v474_v25 }
  0x32   :  { %v197_v7 = vadd.f32 %v196_v60, %v195_v62  ;;  %v319_v29 = vadd.f32 %v318_v19, %v317_v22  ;;  %v330_v44 = vsel %vm178_vm0, %v280_v38, 0.0 }
  0x33   :  { %v332_v46 = vsel %vm178_vm0, %v284_v41, 0.0  ;;  %v334_v14 = vsel %vm178_vm0, %v288_v12, 0.0 }
  0x34   :  { %v199_v17 = vadd.f32 %v198_v5, %v197_v7  ;;  %v321_v33 = vadd.f32 %v320_v24, %v319_v29 }
  0x36   :  { %v201_v2 = vadd.f32 %v200_v13, %v199_v17  ;;  %v323_v37 = vadd.f32 %v322_v31, %v321_v33 }
  0x38   :  { %v203_v3 = vadd.f32 %v202_v21, %v201_v2  ;;  %v325_v40 = vadd.f32 %v324_v4, %v323_v37 }
  0x3a   :  { %v205_v34 = vadd.f32 %v204_v27, %v203_v3  ;;  %v327_v43 = vadd.f32 %v326_v39, %v325_v40 }
  0x3c   :  { %v207_v28 = vadd.f32 %v206_v32, %v205_v34  ;;  %v329_v45 = vadd.f32 %v328_v42, %v327_v43 }
  0x3e   :  { %v209_v8 = vadd.f32 %v208_v36, %v207_v28  ;;  %v331_v47 = vadd.f32 %v330_v44, %v329_v45 }
  0x40   :  { %210 = vadd.xlane.f32.xlu0 %v209_v8  ;;  %v333_v48 = vadd.f32 %v332_v46, %v331_v47 }
  0x42   :  { %v335_v49 = vadd.f32 %v334_v14, %v333_v48 }
  0x44   :  { %336 = vadd.xlane.f32.xlu0 %v335_v49 }
  0xc9   :  { %v211_v50 = vpop.xlane.xlu0 %210 }
  0xca   :  { %v212_v51 = vrot.slane %v211_v50, 4 }
  0xcc   :  { %v213_v15 = vadd.f32 %v212_v51, %v211_v50 }
  0xcd   :  { %v337_v54 = vpop.xlane.xlu0 %336 }
  0xce   :  { %v214_v52 = vrot.slane %v213_v15, 2  ;;  %v338_v56 = vrot.slane %v337_v54, 4 }
  0xd0   :  { %v215_v53 = vadd.f32 %v214_v52, %v213_v15  ;;  %v339_v57 = vadd.f32 %v338_v56, %v337_v54 }
  0xd2   :  { %v216_v55 = vrot.slane %v215_v53, 1  ;;  %v340_v58 = vrot.slane %v339_v57, 2 }
  0xd4   :  { %v217_v25 = vadd.f32 %v216_v55, %v215_v53  ;;  %v341_v59 = vadd.f32 %v340_v58, %v339_v57 }
  0xd6   :  { %366 = vpush %v217_v25  ;;  %v342_v60 = vrot.slane %v341_v59, 1 }
  0xd8   :  { %v343_v61 = vadd.f32 %v342_v60, %v341_v59 }
  0xda   :  { %368 = vpush %v343_v61 }
 0x107   :  { %s367_s0 = spop %366 }
 0x108   :  { %220 = sst [smem:[#allocation9]] %s367_s0 }
 0x10b   :  { %s369_s1 = spop %368 }
 0x10c   :  { %346 = sst [smem:[#allocation9 + $0x1]] %s369_s1 }
 0x10d   :  { %354 = dma.smem_to_hbm %s429_s19, 16, %s546_s2, [#allocation6]  }
 0x10e   :  { %425 = dma.done.wait [#allocation6], 16  }
 0x10f   :  { %426 = vsyncadd [#allocation6], 4294967280 }
 0x110   :  { %358 = sfence }
 0x111   :  { %359 = vsyncpa [#allocation5], 1 }
 0x112   :  { %360 = vsyncpa [#allocation8], 1 }
 0x113   :  { %361 = vsyncpa [#allocation6], 1 }

</bundles_post_ra>
